<compile_context>
chip_gen: v5e
topology: v5e:2x2
jax: 0.10.0
libtpu: 0.0.40
codegen_flags: <defaults>
</compile_context>

<pallas_src>
import jax
import jax.numpy as jnp
from jax.experimental import pallas as pl
from jax.experimental.pallas import tpu as pltpu


def _round_up(x: int, m: int) -> int:
    return (x + m - 1) // m * m


def _sublane(dtype) -> int:
    bits = jnp.dtype(dtype).itemsize * 8
    return {32: 8, 16: 16, 8: 32}.get(bits, 8)


# ---------------------------------------------------------------------------
# Kernels
# ---------------------------------------------------------------------------
def _head_kernel_single_k(x_ref, w_ref, b_ref, o_ref):
    # Whole d_model in one block: single MXU pass + bias add per (i, j) tile.
    o_ref[...] = (
        jnp.dot(x_ref[...], w_ref[...], preferred_element_type=jnp.float32)
        + b_ref[...]
    ).astype(o_ref.dtype)


def _head_kernel_k_tiled(x_ref, w_ref, b_ref, o_ref):
    # f32 output: accumulate directly into o_ref (its index_map ignores k, so the
    # tile stays VMEM-resident across the whole reduction) — no scratch needed.
    k = pl.program_id(2)

    @pl.when(k == 0)
    def _():
        o_ref[...] = jnp.zeros_like(o_ref)

    o_ref[...] += jnp.dot(x_ref[...], w_ref[...], preferred_element_type=jnp.float32)

    @pl.when(k == pl.num_programs(2) - 1)
    def _():
        o_ref[...] += b_ref[...]


def _head_kernel_k_tiled_scratch(x_ref, w_ref, b_ref, o_ref, acc_ref):
    # Non-f32 output: keep an f32 accumulator; bias add + cast once in the epilogue.
    k = pl.program_id(2)

    @pl.when(k == 0)
    def _():
        acc_ref[...] = jnp.zeros_like(acc_ref)

    acc_ref[...] += jnp.dot(x_ref[...], w_ref[...], preferred_element_type=jnp.float32)

    @pl.when(k == pl.num_programs(2) - 1)
    def _():
        o_ref[...] = (acc_ref[...] + b_ref[...]).astype(o_ref.dtype)


# ---------------------------------------------------------------------------
# Wrapper
# ---------------------------------------------------------------------------
def masked_gene_expression_prediction_head(
        token_outputs, w, b, *,
        tm: int = 256, tn: int = 256, tk_max: int = 1024,
        out_dtype=None, compute_dtype=None):
    """logits = token_outputs @ w + b   (PyTorch: nn.Linear(d_model, vocab))

    token_outputs: (B, S, d_model)
    w:             (d_model, expression_vocab_size)  — transpose of torch Linear.weight
    b:             (expression_vocab_size,)
    returns:       (B, S, expression_vocab_size) in `out_dtype` (default: input dtype)
    """
    B, S, D = token_outputs.shape
    V = w.shape[1]
    M = B * S
    out_dtype = jnp.dtype(out_dtype if out_dtype is not None else token_outputs.dtype)

    x = token_outputs.reshape(M, D)
    if compute_dtype is not None:
        # bf16 operands halve HBM read traffic and double MXU rate on all
        # generations; accumulation stays f32 via preferred_element_type.
        x = x.astype(compute_dtype)
        w = w.astype(compute_dtype)

    sub = _sublane(x.dtype)

    # ---- M tile: no x padding; ragged M edge handled by a cdiv grid
    # (out-of-bounds output rows are dropped on writeback).
    tm = _round_up(min(tm, _round_up(M, sub)), sub)
    grid_m = pl.cdiv(M, tm)

    # ---- N tile: lane-dense (multiple of 128), default 256 to fill the
    # 256-wide v6e/v7x MXU with unmasked stores; keep >= 2 (i, j) blocks when
    # possible so both v7x TensorCores get work.
    tn = max(128, _round_up(min(tn, _round_up(V, 128)), 128))
    if grid_m == 1 and V > 128 and pl.cdiv(V, tn) == 1:
        tn = 128
    N_pad = _round_up(V, tn)
    grid_n = N_pad // tn

    # ---- K: single full-extent block when d_model fits (no pad, no k axis,
    # no accumulator); otherwise largest 128-multiple tile dividing K_pad.
    if D <= tk_max:
        tk, k_steps, K_pad = D, 1, D
    else:
        K_pad = _round_up(D, 128)
        tk = 128
        t = 128
        while t <= tk_max:
            if K_pad % t == 0:
                tk = t
            t += 128
        k_steps = K_pad // tk

    # ---- operand padding: w/b are static per-model (cheap, once); x only ever
    # needs a K pad, and only when d_model > tk_max and not a multiple of 128.
    if K_pad != D:
        x = jnp.zeros((M, K_pad), x.dtype).at[:, :D].set(x)
    if K_pad != D or N_pad != V:
        w = jnp.zeros((K_pad, N_pad), w.dtype).at[:D, :V].set(w)
    bp = b.astype(jnp.float32).reshape(1, V)
    if N_pad != V:
        bp = jnp.zeros((1, N_pad), jnp.float32).at[:, :V].set(bp)

    cost = pl.CostEstimate(
        flops=2 * M * K_pad * N_pad,
        transcendentals=0,
        bytes_accessed=(x.size * x.dtype.itemsize + w.size * w.dtype.itemsize
                        + bp.size * 4 + M * N_pad * out_dtype.itemsize),
    )

    if k_steps == 1:
        grid = (grid_m, grid_n)
        in_specs = [
            pl.BlockSpec((tm, K_pad), lambda i, j: (i, 0)),   # activations
            pl.BlockSpec((K_pad, tn), lambda i, j: (0, j)),   # weight
            pl.BlockSpec((1, tn), lambda i, j: (0, j)),       # bias
        ]
        out_specs = pl.BlockSpec((tm, tn), lambda i, j: (i, j))
        kernel = _head_kernel_single_k
        scratch = []
        dims = ("parallel", "parallel")
    else:
        grid = (grid_m, grid_n, k_steps)                       # reduction axis last
        in_specs = [
            pl.BlockSpec((tm, tk), lambda i, j, k: (i, k)),    # activations
            pl.BlockSpec((tk, tn), lambda i, j, k: (k, j)),    # weight
            pl.BlockSpec((1, tn), lambda i, j, k: (0, j)),     # bias
        ]
        out_specs = pl.BlockSpec((tm, tn), lambda i, j, k: (i, j))
        dims = ("parallel", "parallel", "arbitrary")
        if out_dtype == jnp.float32:
            kernel = _head_kernel_k_tiled
            scratch = []
        else:
            kernel = _head_kernel_k_tiled_scratch
            scratch = [pltpu.VMEM((tm, tn), jnp.float32)]

    out = pl.pallas_call(
        kernel,
        out_shape=jax.ShapeDtypeStruct((M, N_pad), out_dtype),
        grid=grid,
        in_specs=in_specs,
        out_specs=out_specs,
        scratch_shapes=scratch,
        compiler_params=pltpu.CompilerParams(dimension_semantics=dims),
        cost_estimate=cost,
    )(x, w, bp)

    if N_pad != V:
        out = out[:, :V]
    return out.reshape(B, S, V)


def reference(token_outputs, w, b):
    B, S, D = token_outputs.shape
    logits = token_outputs.reshape(-1, D) @ w + b
    return logits.reshape(B, S, -1)


if __name__ == "__main__":
    # Small shapes consistent with the module: (batch, seq, d_model) -> vocab logits.
    # d_model=288 exercises the full-extent (non-128-multiple) K block; vocab=136
    # exercises N tiling / lane padding (2 n-tiles of 128).
    batch, seq, d_model, vocab = 2, 8, 288, 136

    key = jax.random.PRNGKey(0)
    kx, kw, kb = jax.random.split(key, 3)

    x = jax.random.normal(kx, (batch, seq, d_model), dtype=jnp.float32)
    # nn.Linear-style init; we store the transpose (in, out) so the kernel does x @ W.
    bound = 1.0 / jnp.sqrt(d_model)
    w = jax.random.uniform(kw, (d_model, vocab), jnp.float32, -bound, bound)
    b = jax.random.uniform(kb, (vocab,), jnp.float32, -bound, bound)

    ref = reference(x, w, b)

    # Fast path: single full-extent K block (no padding of x, no k grid axis).
    out = masked_gene_expression_prediction_head(x, w, b)
    out = jax.block_until_ready(out)
    assert out.shape == (batch, seq, vocab)
    assert jnp.allclose(out, ref, atol=1e-4, rtol=1e-4), "single-K path mismatch"

    # K-tiled path (forced small tk_max): accumulates directly into the f32 output tile.
    out2 = masked_gene_expression_prediction_head(x, w, b, tk_max=128)
    out2 = jax.block_until_ready(out2)
    assert jnp.allclose(out2, ref, atol=1e-4, rtol=1e-4), "k-tiled path mismatch"

    print("KERNEL_OK")
</pallas_src>

<mosaic_0001>
module attributes {stable_mosaic.version = 11 : i64} {
  func.func @_head_kernel_single_k(%arg0: i32, %arg1: i32, %arg2: memref<16x288xf32, #tpu.memory_space<vmem>>, %arg3: memref<288x128xf32, #tpu.memory_space<vmem>>, %arg4: memref<1x128xf32, #tpu.memory_space<vmem>>, %arg5: memref<16x128xf32, #tpu.memory_space<vmem>>) attributes {dimension_semantics = [#tpu.dimension_semantics<parallel>, #tpu.dimension_semantics<parallel>], iteration_bounds = array<i64: 1, 2>, scalar_prefetch = 0 : i64, scratch_operands = 0 : i64, tpu.core_type = #tpu.core_type<tc>, window_params = [{transform_indices = @transform_0, window_bounds = array<i64: 16, 288>}, {transform_indices = @transform_1, window_bounds = array<i64: 288, 128>}, {transform_indices = @transform_2, window_bounds = array<i64: 1, 128>}, {transform_indices = @transform_3, window_bounds = array<i64: 16, 128>}]} {
    %c0 = arith.constant 0 : index
    %c0_0 = arith.constant 0 : index
    %0 = vector.load %arg2[%c0, %c0_0] : memref<16x288xf32, #tpu.memory_space<vmem>>, vector<16x288xf32>
    %c0_1 = arith.constant 0 : index
    %c0_2 = arith.constant 0 : index
    %1 = vector.load %arg3[%c0_1, %c0_2] : memref<288x128xf32, #tpu.memory_space<vmem>>, vector<288x128xf32>
    %cst = arith.constant dense<0.000000e+00> : vector<16x128xf32>
    %2 = tpu.matmul %0, %1, %cst {dimension_numbers = #tpu.dot_dimension_numbers<[1], [0], [0], [1], [0, 0, 1, 1], [], []>} : vector<16x288xf32>, vector<288x128xf32>, vector<16x128xf32> -> vector<16x128xf32>
    %c0_3 = arith.constant 0 : index
    %c0_4 = arith.constant 0 : index
    %3 = vector.load %arg4[%c0_3, %c0_4] : memref<1x128xf32, #tpu.memory_space<vmem>>, vector<1x128xf32>
    %4 = vector.broadcast %3 : vector<1x128xf32> to vector<16x128xf32>
    %5 = arith.addf %2, %4 : vector<16x128xf32>
    %c0_5 = arith.constant 0 : index
    %c0_6 = arith.constant 0 : index
    %6 = vector.load %arg5[%c0_5, %c0_6] : memref<16x128xf32, #tpu.memory_space<vmem>>, vector<16x128xf32>
    tpu.vector_store %arg5[%c0_5, %c0_6], %5 {strides = array<i32>} : memref<16x128xf32, #tpu.memory_space<vmem>>, vector<16x128xf32>,
    return
  }
  func.func @transform_0(%arg0: i32, %arg1: i32) -> (i32, i32) {
    %c0_i32 = arith.constant 0 : i32
    %c0_i32_0 = arith.constant 0 : i32
    return %arg0, %c0_i32 : i32, i32
  }
  func.func @transform_1(%arg0: i32, %arg1: i32) -> (i32, i32) {
    %c0_i32 = arith.constant 0 : i32
    %c0_i32_0 = arith.constant 0 : i32
    return %c0_i32, %arg1 : i32, i32
  }
  func.func @transform_2(%arg0: i32, %arg1: i32) -> (i32, i32) {
    %c0_i32 = arith.constant 0 : i32
    %c0_i32_0 = arith.constant 0 : i32
    return %c0_i32, %arg1 : i32, i32
  }
  func.func @transform_3(%arg0: i32, %arg1: i32) -> (i32, i32) {
    %c0_i32 = arith.constant 0 : i32
    return %arg0, %arg1 : i32, i32
  }
}

</mosaic_0001>

<bundles_post_ra>
// kernel: tpu_custom_call.1
= control target key start
LH: loop header
LB: loop body
LE: loop exit
PB: predicated region body
PF: predicated region fallthrough
CT: control target
= control target key end

     0   :  { %8 = vsyncpa [#allocation3], 0  ;;  %s1054_s0 = inlined_call_operand.hbm [shape: f32[16,288], index: 0, kind: input, shape index: {}]   ;;  %s1055_s1 = inlined_call_operand.hbm [shape: f32[288,256], index: 1, kind: input, shape index: {}]   ;;  %s1056_s2 = inlined_call_operand.hbm [shape: f32[1,256], index: 2, kind: input, shape index: {}]   ;;  %s1057_s3 = inlined_call_operand.hbm [shape: f32[16,256], index: 3, kind: output, shape index: {}]  }
   0x1   :  { %9 = vsyncpa [#allocation6], 0 }
   0x2   :  { %11 = vsyncpa [#allocation6 + $0x1], 0 }
   0x3   :  { %12 = vsyncpa [#allocation4], 0 }
   0x4   :  { %14 = vsyncpa [#allocation4 + $0x1], 0  ;;  %s846_s12 = smov 0   ;;  %s848_s13 = smov 0  }
   0x5   :  { %s850_s14 = smov 0   ;;  %s852_s15 = smov 0  }
   0x6   :  { %s854_s16 = smov 0   ;;  %s856_s17 = smov 0  }
   0x7 LB: > { %s29_s18 = sadd.s32 1, %s811_s16  ;;  %s65_s19 = sadd.s32 1, %s803_s14  ;;  %s815_s17 = sphi %s856_s17, %s20_s17   ;;  %s811_s16 = sphi %s854_s16, %s1067_s16   ;;  %s807_s15 = sphi %s852_s15, %s1066_s15   ;;  %s803_s14 = sphi %s850_s14, %s1065_s14   ;;  %s799_s13 = sphi %s848_s13, %s1064_s13   ;;  %s795_s12 = sphi %s846_s12, %s1063_s12  }
   0x8   : > { %p30_p0 = scmp.ge.s32.totalorder %s29_s18, 2  ;;  %p72_p1 = scmp.ne.s32.totalorder %s803_s14, %s799_s13 }
   0x9   : > { %p73_p2 = scmp.eq.s32.totalorder %s815_s17, 0  ;;  %p523_p3 = scmp.ge.s32.totalorder %s815_s17, 2 }
   0xa   : > { %s1069_s18 = smov (%p30_p0, %s29_s18), 0  ;;  %p578_p5 = scmp.lt.s32.totalorder %s815_s17, 2 }
   0xb   : > { %p74_p4 = por %p73_p2, %p72_p1  ;;  %s62_s20 = ssub.s32 %s811_s16, %s1069_s18 }
   0xc   : > { %s174_s21 = sand.u32 1, %s815_s17   ;;  %p63_p6 = scmp.eq.s32.totalorder %s62_s20, 0 }
   0xd   : > { %s176_s22 = sand.u32 1, %s803_s14   ;;  %s524_s23 = sshll.u32 %s811_s16, 3 }
   0xe   : > { %s894_s24 = scalar_select %p63_p6, %s803_s14, %s65_s19  }
   0xf   : > { %s550_s25 = smul.u32 288, %s176_s22  ;;  %s182_s28 = scalar_lea.hbm %s1055_s1, %s524_s23 }
  0x10   : > { %s183_s29 = sshll.u32 %s182_s28, 4  ;;  %p901_p7 = pnand %p578_p5, %p74_p4  ;;  %s184_s29 = int_to_ptr.hbm [resolvable:$true] %s183_s29 }
  0x11   : > { %s178_s4 = scalar_lea.vmem [#allocation5], %s550_s25  ;;  %s905_s6 = scalar_lea.sflag [#allocation6], %s174_s21 }
  0x12   : > { %s185_s5 = sshll.u32 %s178_s4, 4  ;;  %s817_s7 = smov 256   ;;  %s186_s5 = int_to_ptr.vmem [resolvable:$true] %s185_s5 }
  0x13   : > { %s818_s8 = smov 128   ;;  %s819_s9 = smov 8  }
  0x14   : > { %569 = dma.hbm_to_vmem [thread:$0]  (!%p901_p7), %s184_s29, 4608, %s186_s5, %s905_s6, %s817_s7, %s818_s8, %s819_s9  }
  0x15   : > { %s911_s10 = sadd.s32 4294967295, %s815_s17   ;;  %s520_s11 = sadd.s32 4294967294, %s815_s17  }
  0x16   : > { %p78_p8 = scmp.ne.s32.totalorder %s799_s13, %s795_s12  ;;  %p79_p9 = scmp.eq.s32.totalorder %s911_s10, 0 }
  0x17   : > { %p130_p10 = scmp.eq.s32.totalorder %s911_s10, 1  ;;  %p136_p11 = scmp.eq.s32.totalorder %s520_s11, 1 }
  0x18   : > { %p920_p12 = por %p79_p9, %p78_p8  ;;  %p521_p13 = scmp.ge.s32.totalorder %s815_s17, 1 }
  0x19   : > { %p928_p0 = por %p130_p10, %p72_p1  ;;  %p932_p2 = por %p136_p11, %p78_p8 }
  0x1a   : > { %p143_p4 = scmp.lt.s32.totalorder %s815_s17, 3  ;;  %s158_s26 = sshll.u32 %s1054_s0, 4  ;;  %s159_s26 = int_to_ptr.hbm [resolvable:$true] %s158_s26 }
  0x1b   : > { %s820_s28 = smov [#allocation2]   ;;  %s201_s7 = scalar_lea.hbm %s1056_s2, %s811_s16 }
  0x1c   : > { %p940_p5 = pnand %p521_p13, %p143_p4  ;;  %s160_s29 = sshll.u32 %s820_s28, 4  ;;  %s161_s29 = int_to_ptr.vmem [resolvable:$true] %s160_s29 }
  0x1d   : > { %s203_s8 = sshll.u32 %s201_s7, 4  ;;  %s198_s9 = scalar_lea.vmem [#allocation7], %s176_s22  ;;  %s204_s8 = int_to_ptr.hbm [resolvable:$true] %s203_s8 }
  0x1e   : > { %p562_p1 = pneg %p940_p5  ;;  %s205_s11 = sshll.u32 %s198_s9, 4  ;;  %s206_s11 = int_to_ptr.vmem [resolvable:$true] %s205_s11 }
  0x1f   : > { %s821_s23 = smov 384   ;;  %s822_s25 = smov 24  }
  0x20   : > { %p563_p6 = pnand %p562_p1, %p79_p9  ;;  %214 = sbr.rel (%p940_p5) target bundleno = 219 (0xdb), region = 32 }
  0x21   : > { %572 = dma.hbm_to_vmem [thread:$0]  (!%p901_p7), %s204_s8, 16, %s206_s11, %s905_s6  }
  0x22   : > { %565 = dma.hbm_to_vmem [thread:$0]  (!%p563_p6), %s159_s26, 768, %s161_s29, [#allocation3], %s821_s23, %s821_s23, %s822_s25  }
  0x25   : > { %782 = dma.done.wait (%p79_p9), [#allocation3], 768  }
  0x26   : > { %784 = vsyncadd (%p79_p9), [#allocation3], 4294966528  ;;  %s221_s22 = sand.u32 1, %s911_s10   ;;  %s965_s28 = sand.u32 1, %s799_s13  }
  0x27   : > { %s551_s26 = smul.u32 288, %s965_s28  ;;  %s222_s29 = scalar_lea.sflag [#allocation6], %s221_s22 }
  0x29   : > { %s968_s30 = scalar_lea.vmem [#allocation5], %s551_s26 }
  0x2a   : > { %786 = dma.done.wait (%p920_p12), %s222_s29, 4624  }
  0x2b   : > { %788 = vsyncadd (%p920_p12), %s222_s29, 4294962672  ;;  %v285_v0 = vld [vmem:[%s968_s30 + $0x78] sm:$0xff]  ;;  %v284_v2 = vld [vmem:[%s968_s30 + $0x70] sm:$0xff]  ;;  %vm310_vm0 = vcmask 261120   ;;  %s234_s6 = scalar_lea.vmem [#allocation7], %s965_s28  ;;  %s527_s10 = sshll.u32 %s965_s28, 4 }
  0x2c   : > { %v301_v1 = vld [vmem:[%s968_s30 + $0xf8] sm:$0xff]  ;;  %317 = vmatpush.msra.mxu0 %v285_v0  ;;  %534 = vmatpush.msra.mxu3 %v285_v0  ;;  %v300_v3 = vld [vmem:[%s968_s30 + $0xf0] sm:$0xff]  ;;  %v283_v4 = vld [vmem:[%s968_s30 + $0x68] sm:$0xff]  ;;  %s531_s19 = sshll.u32 %s807_s15, 3  ;;  %s261_s7 = scalar_lea.vmem [#allocation8], %s527_s10 }
  0x2d   : > { %340 = vmatpush.msra.mxu1 %v301_v1  ;;  %v299_v5 = vld [vmem:[%s968_s30 + $0xe8] sm:$0xff]  ;;  %v282_v6 = vld [vmem:[%s968_s30 + $0x60] sm:$0xff]  ;;  %v281_v8 = vld [vmem:[%s968_s30 + $0x58] sm:$0xff]  ;;  %s402_s5 = scalar_lea.hbm %s1057_s3, %s531_s19  ;;  %s403_s8 = sshll.u32 %s261_s7, 4  ;;  %s404_s8 = int_to_ptr.vmem [resolvable:$true] %s403_s8 }
  0x2e   : > { %318 = vmatpush.msra.mxu0 %v284_v2  ;;  %535 = vmatpush.msra.mxu3 %v284_v2  ;;  %v298_v7 = vld [vmem:[%s968_s30 + $0xe0] sm:$0xff]  ;;  %v297_v9 = vld [vmem:[%s968_s30 + $0xd8] sm:$0xff]  ;;  %v280_v11 = vld [vmem:[%s968_s30 + $0x50] sm:$0xff]  ;;  %s405_s9 = sshll.u32 %s402_s5, 4  ;;  %s389_s15 = scalar_lea.sflag [#allocation4], %s965_s28  ;;  %s406_s9 = int_to_ptr.hbm [resolvable:$true] %s405_s9 }
  0x2f   : > { %341 = vmatpush.msra.mxu1 %v300_v3  ;;  %v305_v10 = vld [vmem:[%s968_s30 + $0x118] sm:$0xff]  ;;  %v304_v12 = vld [vmem:[%s968_s30 + $0x110] sm:$0xff]  ;;  %v303_v14 = vld [vmem:[%s968_s30 + $0x108] sm:$0xff]  ;;  %s743_s11 = sshra.s32 %s406_s9, 4  ;;  %s749_s26 = scalar_lea.hbm %s1057_s3, 32  ;;  %s744_s11 = int_to_ptr.hbm [resolvable:$true] %s743_s11 }
  0x30   : > { %319 = vmatpush.msra.mxu0 %v283_v4  ;;  %536 = vmatpush.msra.mxu3 %v283_v4  ;;  %v296_v13 = vld [vmem:[%s968_s30 + $0xd0] sm:$0xff]  ;;  %v279_v15 = vld [vmem:[%s968_s30 + $0x48] sm:$0xff]  ;;  %v302_v17 = vld [vmem:[%s968_s30 + $0x100] sm:$0xff]  ;;  %s745_s23 = scalar_lea.hbm %s744_s11, 16  ;;  %p750_p10 = scmp.lt.s32.totalorder %s744_s11, %s1057_s3 }
  0x31   : > { %342 = vmatpush.msra.mxu1 %v299_v5  ;;  %375 = vmatpush.msra.mxu2 %v305_v10  ;;  %v295_v16 = vld [vmem:[%s968_s30 + $0xc8] sm:$0xff]  ;;  %v278_v18 = vld [vmem:[%s968_s30 + $0x40] sm:$0xff]  ;;  %v277_v21 = vld [vmem:[%s968_s30 + $0x38] sm:$0xff]  ;;  %p746_p7 = scmp.ne.s32.totalorder %s744_s11, %s745_s23  ;;  %p751_p11 = scmp.lt.s32.totalorder %s749_s26, %s745_s23 }
  0x32   : > { %320 = vmatpush.msra.mxu0 %v282_v6  ;;  %537 = vmatpush.msra.mxu3 %v282_v6  ;;  %v294_v19 = vld [vmem:[%s968_s30 + $0xc0] sm:$0xff]  ;;  %v293_v22 = vld [vmem:[%s968_s30 + $0xb8] sm:$0xff]  ;;  %v276_v23 = vld [vmem:[%s968_s30 + $0x30] sm:$0xff] }
  0x33   : > { %343 = vmatpush.msra.mxu1 %v298_v7  ;;  %376 = vmatpush.msra.mxu2 %v304_v12  ;;  %v266_v20 = vld [vmem:[#allocation2 + $0x10] sm:$0xff]  ;;  %v292_v24 = vld [vmem:[%s968_s30 + $0xb0] sm:$0xff]  ;;  %v275_v25 = vld [vmem:[%s968_s30 + $0x28] sm:$0xff]  ;;  %p747_p8 = pnand %p746_p7, %p928_p0  ;;  %p752_p12 = por %p751_p11, %p750_p10 }
  0x34   : > { %321 = vmatpush.msra.mxu0 %v281_v8  ;;  %538 = vmatpush.msra.mxu3 %v281_v8  ;;  %v291_v26 = vld [vmem:[%s968_s30 + $0xa8] sm:$0xff]  ;;  %v274_v27 = vld [vmem:[%s968_s30 + $0x20] sm:$0xff]  ;;  %v269_v29 = vld [vmem:[#allocation2 + $0x28] sm:$0xff] }
  0x35   : > { %344 = vmatpush.msra.mxu1 %v297_v9  ;;  %377 = vmatpush.msra.mxu2 %v303_v14  ;;  %v290_v28 = vld [vmem:[%s968_s30 + $0xa0] sm:$0xff]  ;;  %v273_v30 = vld [vmem:[%s968_s30 + $0x18] sm:$0xff]  ;;  %v272_v32 = vld [vmem:[%s968_s30 + $0x10] sm:$0xff]  ;;  %p748_p9 = pneg %p747_p8 }
  0x36   : > { %322 = vmatpush.msra.mxu0 %v280_v11  ;;  %539 = vmatpush.msra.mxu3 %v280_v11  ;;  %v289_v31 = vld [vmem:[%s968_s30 + $0x98] sm:$0xff]  ;;  %v288_v33 = vld [vmem:[%s968_s30 + $0x90] sm:$0xff]  ;;  %v271_v34 = vld [vmem:[%s968_s30 + $0x8] sm:$0xff] }
  0x37   : > { %345 = vmatpush.msra.mxu1 %v296_v13  ;;  %378 = vmatpush.msra.mxu2 %v302_v17  ;;  %v287_v35 = vld [vmem:[%s968_s30 + $0x88] sm:$0xff]  ;;  %v270_v36 = vld [vmem:[%s968_s30] sm:$0xff]  ;;  %v264_v38 = vld [vmem:[#allocation2] sm:$0xff]  ;;  %p753_p13 = pnand %p752_p12, %p748_p9 }
  0x38   : > { %323 = vmatpush.msra.mxu0 %v279_v15  ;;  %540 = vmatpush.msra.mxu3 %v279_v15  ;;  %v286_v37 = vld [vmem:[%s968_s30 + $0x80] sm:$0xff]  ;;  %v267_v39 = vld [vmem:[#allocation2 + $0x18] sm:$0xff]  ;;  %v265_v40 = vld [vmem:[#allocation2 + $0x8] sm:$0xff] }
  0x39   : > { %346 = vmatpush.msra.mxu1 %v295_v16  ;;  %528 = vmatmul.msk.f32.vlgmr.msra.gmra.mxu2 %vm310_vm0, %v266_v20  ;;  %v268_v41 = vld [vmem:[#allocation2 + $0x20] sm:$0xff] }
  0x3a   : > { %324 = vmatpush.msra.mxu0 %v278_v18  ;;  %541 = vmatpush.msra.mxu3 %v278_v18  ;;  %v638_v42 = vld [vmem:[%s234_s6] ss:$0 sm:$0xff] }
  0x3b   : > { %347 = vmatpush.msra.mxu1 %v294_v19 }
  0x3c   : > { %325 = vmatpush.msra.mxu0 %v277_v21  ;;  %542 = vmatpush.msra.mxu3 %v277_v21 }
  0x3d   : > { %348 = vmatpush.msra.mxu1 %v293_v22 }
  0x3e   : > { %326 = vmatpush.msra.mxu0 %v276_v23  ;;  %543 = vmatpush.msra.mxu3 %v276_v23 }
  0x3f   : > { %349 = vmatpush.msra.mxu1 %v292_v24 }
  0x40   : > { %327 = vmatpush.msra.mxu0 %v275_v25  ;;  %544 = vmatpush.msra.mxu3 %v275_v25 }
  0x41   : > { %350 = vmatpush.msra.mxu1 %v291_v26  ;;  %529 = vmatmul.msk.f32.gmra.mxu2 %vm310_vm0, %v269_v29 }
  0x42   : > { %328 = vmatpush.msra.mxu0 %v274_v27  ;;  %545 = vmatpush.msra.mxu3 %v274_v27 }
  0x43   : > { %351 = vmatpush.msra.mxu1 %v290_v28 }
  0x44   : > { %329 = vmatpush.msra.mxu0 %v273_v30  ;;  %546 = vmatpush.msra.mxu3 %v273_v30 }
  0x45   : > { %352 = vmatpush.msra.mxu1 %v289_v31 }
  0x46   : > { %330 = vmatpush.msra.mxu0 %v272_v32  ;;  %547 = vmatpush.msra.mxu3 %v272_v32 }
  0x47   : > { %353 = vmatpush.msra.mxu1 %v288_v33 }
  0x48   : > { %331 = vmatpush.msra.mxu0 %v271_v34  ;;  %548 = vmatpush.msra.mxu3 %v271_v34 }
  0x49   : > { %354 = vmatpush.msra.mxu1 %v287_v35 }
  0x4a   : > { %332 = vmatpush.msra.mxu0 %v270_v36  ;;  %549 = vmatpush.msra.mxu3 %v270_v36 }
  0x4b   : > { %355 = vmatpush.msra.mxu1 %v286_v37  ;;  %333 = vmatmul.f32.vlgmr.msra.gmra.mxu0 %v264_v38 }
  0x4c   : > { %336 = vmatmul.f32.vlgmr.msra.gmra.mxu3 %v267_v39  ;;  %356 = vmatmul.f32.vlgmr.msra.gmra.mxu1 %v265_v40 }
  0x54   : > { %359 = vmatmul.f32.gmra.mxu1 %v268_v41 }
  0xbc   : > { %v380_v43 = vpop.f32.mrf.mxu2 }
  0xc4   : > { %v383_v52 = vpop.f32.mrf.mxu2 }
  0xc8   : > { %v334_v44 = vpop.f32.mrf.mxu0 }
  0xc9   : > { %v335_v45 = vadd.f32 %v638_v42, %v334_v44  ;;  %v357_v46 = vpop.f32.mrf.mxu1 }
  0xcb   : > { %v358_v47 = vadd.f32 %v357_v46, %v335_v45 }
  0xcd   : > { %v381_v48 = vadd.f32 %v380_v43, %v358_v47 }
  0xcf   : > { %386 = vst [vmem:[%s261_s7] sm:$0xff] %v381_v48  ;;  %v337_v49 = vpop.f32.mrf.mxu3 }
  0xd0   : > { %v338_v50 = vadd.f32 %v638_v42, %v337_v49 }
  0xd1   : > { %v360_v51 = vpop.f32.mrf.mxu1 }
  0xd2   : > { %v361_v53 = vadd.f32 %v360_v51, %v338_v50 }
  0xd4   : > { %v384_v54 = vadd.f32 %v383_v52, %v361_v53 }
  0xd6   : > { %387 = vst [vmem:[%s261_s7 + $0x8] sm:$0xff] %v384_v54 }
  0xd7   : > { %756 = shalt.err (!%p753_p13)
}
  0xd8   : > { %s823_s28 = smov 128   ;;  %s824_s6 = smov 256  }
  0xd9   : > { %s825_s10 = smov 8  }
  0xda   : > { %560 = dma.vmem_to_hbm [thread:$0]  (%p928_p0), %s404_s8, 256, %s406_s9, %s389_s15, %s823_s28, %s824_s6, %s825_s10  }
  0xdb PF: > { %s420_s19 = sand.u32 1, %s795_s12   ;;  %p574_p4 = pnand %p523_p3, %p932_p2 }
  0xdc   : > { %s421_s27 = scalar_lea.sflag [#allocation4], %s420_s19 }
  0xdd   : > { %p575_p5 = pneg %p574_p4 }
  0xdf   : > { %790 = dma.done.wait (%p575_p5), %s421_s27, 256  }
  0xe0   : > { %792 = vsyncadd (%p575_p5), %s421_s27, 4294967040  ;;  %s20_s17 = sadd.s32 1, %s815_s17   ;;  %s1063_s12 = smov %s799_s13 }
  0xe1   : > { %p17_p1 = scmp.ge.s32.totalorder %s20_s17, 4   ;;  %s1064_s13 = smov %s803_s14 }
  0xe2   : > { %s1065_s14 = smov %s894_s24  ;;  %s1066_s15 = smov %s811_s16 }
  0xe3   : > { %s1067_s16 = smov %s1069_s18  ;;  %19 = sbr.rel (!%p17_p1) target bundleno = 7 (0x7), region = 94 }
  0xe8   :  { %427 = vsyncpa [#allocation3], 1 }
  0xe9   :  { %429 = vsyncpa [#allocation3 + $0x1], 1 }
  0xea   :  { %430 = vsyncpa [#allocation6], 1 }
  0xeb   :  { %432 = vsyncpa [#allocation6 + $0x1], 1 }
  0xec   :  { %433 = vsyncpa [#allocation4], 1 }
  0xed   :  { %435 = vsyncpa [#allocation4 + $0x1], 1 }

</bundles_post_ra>
